<compile_context>
chip_gen: v6e
topology: v6e:2x2x1
jax: 0.10.0
libtpu: 0.0.40
codegen_flags: <defaults>
</compile_context>

<pallas_src>
import jax
import jax.numpy as jnp
from jax.experimental import pallas as pl
from jax.experimental.pallas import tpu as pltpu


def _round_up(x, m):
    return ((x + m - 1) // m) * m


# ------------------------------------------------------------------- kernel
def _make_loss_kernel(cls_factor, box_factor, land_factor):
    def kernel(pred_ref, label_ref, bbox_ref, land_ref, valid_ref,
               out_ref, acc_ref):
        step = pl.program_id(0)

        @pl.when(step == 0)
        def _init():
            for i in range(6):
                acc_ref[i] = 0.0

        pred = pred_ref[...]                           # (TN, 15) f32
        label = label_ref[...]                         # (TN, 1)  f32
        valid = valid_ref[...] > 0.0                   # (TN, 1)  bool (padding rows excluded)

        # --- classification: BCE(sigmoid(pred[:,0]), label) over label >= 0 ---
        logit = pred[:, 0:1]                           # (TN, 1)
        m_cls = ((label >= 0.0) & valid).astype(jnp.float32)
        # log(sigmoid(x)) / log(1 - sigmoid(x)), clamped at -100 like nn.BCELoss
        log_p = jnp.maximum(jax.nn.log_sigmoid(logit), -100.0)
        log_1mp = jnp.maximum(jax.nn.log_sigmoid(-logit), -100.0)
        bce = -(label * log_p + (1.0 - label) * log_1mp)
        acc_ref[0] += jnp.sum(bce * m_cls)
        acc_ref[1] += jnp.sum(m_cls)

        # --- bbox regression: MSE(pred[:,1:5], gt_bbox) over label != 0 ---
        if box_factor != 0.0:
            m_box = ((label != 0.0) & valid).astype(jnp.float32)
            d = pred[:, 1:5] - bbox_ref[...]
            acc_ref[2] += jnp.sum(d * d * m_box)
            acc_ref[3] += jnp.sum(m_box) * 4.0

        # --- landmark regression: MSE(pred[:,5:15], gt_landmark) over label == -2 ---
        if land_factor != 0.0:
            m_land = ((label == -2.0) & valid).astype(jnp.float32)
            d = pred[:, 5:15] - land_ref[...]
            acc_ref[4] += jnp.sum(d * d * m_land)
            acc_ref[5] += jnp.sum(m_land) * 10.0

        @pl.when(step == pl.num_programs(0) - 1)
        def _finalize():
            def safe_mean(s, c):
                # mean over the masked selection; empty mask (NaN in torch) -> 0
                return jnp.where(c > 0.0, s / jnp.maximum(c, 1.0), 0.0)

            cls_l = safe_mean(acc_ref[0], acc_ref[1])
            box_l = (safe_mean(acc_ref[2], acc_ref[3])
                     if box_factor != 0.0 else jnp.float32(0.0))
            land_l = (safe_mean(acc_ref[4], acc_ref[5])
                      if land_factor != 0.0 else jnp.float32(0.0))
            total = (cls_l * cls_factor + box_l * box_factor
                     + land_l * land_factor)
            out_ref[0] = total
            out_ref[1] = cls_l
            out_ref[2] = box_l
            out_ref[3] = land_l

    return kernel


# ------------------------------------------------------------------ wrapper
def loss_fn_forward(pred, gt_label, gt_bbox, gt_landmark,
                    cls_factor=1.0, box_factor=1.0, land_factor=1.0,
                    tile_rows=1024):
    """Pallas equivalent of LossFn(cls_factor, box_factor, land_factor).forward."""
    N = pred.shape[0]
    pred = pred.reshape(N, 15).astype(jnp.float32)          # pred.view(N, 15)
    label = gt_label.reshape(N, 1).astype(jnp.float32)
    bbox = gt_bbox.reshape(N, 4).astype(jnp.float32)
    land = gt_landmark.reshape(N, 10).astype(jnp.float32)
    valid = jnp.ones((N, 1), jnp.float32)

    # Row-tile the batch (rows on the sublane axis); pad to a tile multiple.
    # Padding rows are excluded from every mask via `valid`.
    TN = min(_round_up(tile_rows, 8), _round_up(max(N, 1), 8))
    Np = _round_up(N, TN)
    if Np != N:
        padrows = lambda a: jnp.pad(a, ((0, Np - N), (0, 0)))
        pred, label, bbox, land, valid = map(
            padrows, (pred, label, bbox, land, valid))

    out = pl.pallas_call(
        _make_loss_kernel(float(cls_factor), float(box_factor), float(land_factor)),
        out_shape=jax.ShapeDtypeStruct((4,), jnp.float32),
        grid=(Np // TN,),
        in_specs=[
            pl.BlockSpec((TN, 15), lambda i: (i, 0)),
            pl.BlockSpec((TN, 1), lambda i: (i, 0)),
            pl.BlockSpec((TN, 4), lambda i: (i, 0)),
            pl.BlockSpec((TN, 10), lambda i: (i, 0)),
            pl.BlockSpec((TN, 1), lambda i: (i, 0)),
        ],
        out_specs=pl.BlockSpec(memory_space=pltpu.MemorySpace.SMEM),
        scratch_shapes=[pltpu.SMEM((6,), jnp.float32)],
        compiler_params=pltpu.CompilerParams(
            dimension_semantics=("arbitrary",)),   # sequential reduction axis
    )(pred, label, bbox, land, valid)

    return out[0], out[1], out[2], out[3]


# ---------------------------------------------------------------- reference
def loss_reference(pred, gt_label, gt_bbox, gt_landmark,
                   cls_factor=1.0, box_factor=1.0, land_factor=1.0):
    pred = pred.reshape(pred.shape[0], 15).astype(jnp.float32)
    label = gt_label.reshape(-1).astype(jnp.float32)

    logit = pred[:, 0]
    log_p = jnp.maximum(jax.nn.log_sigmoid(logit), -100.0)
    log_1mp = jnp.maximum(jax.nn.log_sigmoid(-logit), -100.0)
    bce = -(label * log_p + (1.0 - label) * log_1mp)
    m_cls = (label >= 0.0).astype(jnp.float32)
    c = jnp.sum(m_cls)
    cls_loss = jnp.where(c > 0, jnp.sum(bce * m_cls) / jnp.maximum(c, 1.0), 0.0)

    m_box = (label != 0.0).astype(jnp.float32)
    d = pred[:, 1:5] - gt_bbox.astype(jnp.float32)
    cb = jnp.sum(m_box) * 4.0
    box_loss = jnp.where(cb > 0, jnp.sum(d * d * m_box[:, None]) / jnp.maximum(cb, 1.0), 0.0)
    if box_factor == 0:
        box_loss = jnp.float32(0.0)

    m_land = (label == -2.0).astype(jnp.float32)
    d = pred[:, 5:15] - gt_landmark.astype(jnp.float32)
    cl = jnp.sum(m_land) * 10.0
    land_loss = jnp.where(cl > 0, jnp.sum(d * d * m_land[:, None]) / jnp.maximum(cl, 1.0), 0.0)
    if land_factor == 0:
        land_loss = jnp.float32(0.0)

    total = cls_loss * cls_factor + box_loss * box_factor + land_loss * land_factor
    return total, cls_loss, box_loss, land_loss


if __name__ == "__main__":
    key = jax.random.PRNGKey(0)
    k1, k2, k3 = jax.random.split(key, 3)

    N = 6
    pred = jax.random.normal(k1, (N, 15), jnp.float32)
    # labels from {1, 0, -1, -2}: exercises all three masks + row padding (N=6 -> 8)
    gt_label = jnp.array([1.0, 0.0, -1.0, -2.0, 1.0, -2.0], jnp.float32)
    gt_bbox = jax.random.normal(k2, (N, 4), jnp.float32)
    gt_landmark = jax.random.normal(k3, (N, 10), jnp.float32)

    total, cls_l, box_l, land_l = loss_fn_forward(pred, gt_label, gt_bbox, gt_landmark)
    total = jax.block_until_ready(total)

    ref = loss_reference(pred, gt_label, gt_bbox, gt_landmark)
    got = jnp.stack([total, cls_l, box_l, land_l])
    want = jnp.stack(ref)
    assert jnp.allclose(got, want, atol=1e-5, rtol=1e-5), (got, want)
    print("KERNEL_OK")
</pallas_src>

<mosaic_0001>
module attributes {stable_mosaic.version = 11 : i64} {
  func.func @kernel(%arg0: i32, %arg1: memref<8x15xf32, #tpu.memory_space<vmem>>, %arg2: memref<8x1xf32, #tpu.memory_space<vmem>>, %arg3: memref<8x4xf32, #tpu.memory_space<vmem>>, %arg4: memref<8x10xf32, #tpu.memory_space<vmem>>, %arg5: memref<8x1xf32, #tpu.memory_space<vmem>>, %arg6: memref<4xf32, #tpu.memory_space<smem>>, %arg7: memref<6xf32, #tpu.memory_space<smem>>) attributes {dimension_semantics = [#tpu.dimension_semantics<arbitrary>], iteration_bounds = array<i64: 1>, scalar_prefetch = 0 : i64, scratch_operands = 1 : i64, tpu.core_type = #tpu.core_type<tc>, window_params = [{transform_indices = @transform_0, window_bounds = array<i64: 8, 15>}, {transform_indices = @transform_1, window_bounds = array<i64: 8, 1>}, {transform_indices = @transform_2, window_bounds = array<i64: 8, 4>}, {transform_indices = @transform_3, window_bounds = array<i64: 8, 10>}, {transform_indices = @transform_4, window_bounds = array<i64: 8, 1>}, {transform_indices = @transform_5, window_bounds = array<i64: 4>}]} {
    %c0_i32 = arith.constant 0 : i32
    %0 = arith.cmpi eq, %arg0, %c0_i32 : i32
    %1 = arith.extui %0 : i1 to i32
    %c0_i32_0 = arith.constant 0 : i32
    %2 = arith.cmpi ne, %1, %c0_i32_0 : i32
    scf.if %2 {
      %cst_43 = arith.constant 0.000000e+00 : f32
      %c0_44 = arith.constant 0 : index
      %133 = memref.load %arg7[%c0_44] : memref<6xf32, #tpu.memory_space<smem>>
      memref.store %cst_43, %arg7[%c0_44] : memref<6xf32, #tpu.memory_space<smem>>
      %cst_45 = arith.constant 0.000000e+00 : f32
      %c1_46 = arith.constant 1 : index
      %134 = memref.load %arg7[%c1_46] : memref<6xf32, #tpu.memory_space<smem>>
      memref.store %cst_45, %arg7[%c1_46] : memref<6xf32, #tpu.memory_space<smem>>
      %cst_47 = arith.constant 0.000000e+00 : f32
      %c2_48 = arith.constant 2 : index
      %135 = memref.load %arg7[%c2_48] : memref<6xf32, #tpu.memory_space<smem>>
      memref.store %cst_47, %arg7[%c2_48] : memref<6xf32, #tpu.memory_space<smem>>
      %cst_49 = arith.constant 0.000000e+00 : f32
      %c3_50 = arith.constant 3 : index
      %136 = memref.load %arg7[%c3_50] : memref<6xf32, #tpu.memory_space<smem>>
      memref.store %cst_49, %arg7[%c3_50] : memref<6xf32, #tpu.memory_space<smem>>
      %cst_51 = arith.constant 0.000000e+00 : f32
      %c4_52 = arith.constant 4 : index
      %137 = memref.load %arg7[%c4_52] : memref<6xf32, #tpu.memory_space<smem>>
      memref.store %cst_51, %arg7[%c4_52] : memref<6xf32, #tpu.memory_space<smem>>
      %cst_53 = arith.constant 0.000000e+00 : f32
      %c5_54 = arith.constant 5 : index
      %138 = memref.load %arg7[%c5_54] : memref<6xf32, #tpu.memory_space<smem>>
      memref.store %cst_53, %arg7[%c5_54] : memref<6xf32, #tpu.memory_space<smem>>
    } else {
    }
    %c0 = arith.constant 0 : index
    %c0_1 = arith.constant 0 : index
    %3 = vector.load %arg1[%c0, %c0_1] : memref<8x15xf32, #tpu.memory_space<vmem>>, vector<8x15xf32>
    %c0_2 = arith.constant 0 : index
    %c0_3 = arith.constant 0 : index
    %4 = vector.load %arg2[%c0_2, %c0_3] : memref<8x1xf32, #tpu.memory_space<vmem>>, vector<8x1xf32>
    %c0_4 = arith.constant 0 : index
    %c0_5 = arith.constant 0 : index
    %5 = vector.load %arg5[%c0_4, %c0_5] : memref<8x1xf32, #tpu.memory_space<vmem>>, vector<8x1xf32>
    %cst = arith.constant 0.000000e+00 : f32
    %6 = vector.broadcast %cst : f32 to vector<8x1xf32>
    %7 = arith.cmpf ogt, %5, %6 : vector<8x1xf32>
    %8 = vector.extract_strided_slice %3 {offsets = [0, 0], sizes = [8, 1], strides = [1, 1]} : vector<8x15xf32> to vector<8x1xf32>
    %cst_6 = arith.constant 0.000000e+00 : f32
    %9 = vector.broadcast %cst_6 : f32 to vector<8x1xf32>
    %10 = arith.cmpf oge, %4, %9 : vector<8x1xf32>
    %11 = arith.andi %10, %7 : vector<8x1xi1>
    %12 = arith.extui %11 : vector<8x1xi1> to vector<8x1xi32>
    %13 = arith.sitofp %12 : vector<8x1xi32> to vector<8x1xf32>
    %cst_7 = arith.constant 0.000000e+00 : f32
    %14 = vector.broadcast %cst_7 : f32 to vector<8x1xf32>
    %15 = arith.subf %14, %8 : vector<8x1xf32>
    %cst_8 = arith.constant 0.000000e+00 : f32
    %16 = vector.broadcast %cst_8 : f32 to vector<8x1xf32>
    %17 = arith.maximumf %15, %16 : vector<8x1xf32>
    %18 = vector.broadcast %cst_8 : f32 to vector<8x1xf32>
    %19 = arith.subf %15, %18 : vector<8x1xf32>
    %20 = arith.cmpf one, %19, %19 : vector<8x1xf32>
    %21 = vector.broadcast %cst_8 : f32 to vector<8x1xf32>
    %22 = arith.addf %15, %21 : vector<8x1xf32>
    %23 = math.absf %19 : vector<8x1xf32>
    %cst_9 = arith.constant 0.000000e+00 : f32
    %24 = vector.broadcast %cst_9 : f32 to vector<8x1xf32>
    %25 = arith.subf %24, %23 : vector<8x1xf32>
    %26 = math.exp %25 : vector<8x1xf32>
    %27 = math.log1p %26 : vector<8x1xf32>
    %28 = arith.addf %17, %27 : vector<8x1xf32>
    %29 = arith.select %20, %22, %28 : vector<8x1xi1>, vector<8x1xf32>
    %cst_10 = arith.constant 0.000000e+00 : f32
    %30 = vector.broadcast %cst_10 : f32 to vector<8x1xf32>
    %31 = arith.subf %30, %29 : vector<8x1xf32>
    %cst_11 = arith.constant -1.000000e+02 : f32
    %32 = vector.broadcast %cst_11 : f32 to vector<8x1xf32>
    %33 = arith.maximumf %31, %32 : vector<8x1xf32>
    %cst_12 = arith.constant 0.000000e+00 : f32
    %34 = vector.broadcast %cst_12 : f32 to vector<8x1xf32>
    %35 = arith.subf %34, %8 : vector<8x1xf32>
    %cst_13 = arith.constant 0.000000e+00 : f32
    %36 = vector.broadcast %cst_13 : f32 to vector<8x1xf32>
    %37 = arith.subf %36, %35 : vector<8x1xf32>
    %cst_14 = arith.constant 0.000000e+00 : f32
    %38 = vector.broadcast %cst_14 : f32 to vector<8x1xf32>
    %39 = arith.maximumf %37, %38 : vector<8x1xf32>
    %40 = vector.broadcast %cst_14 : f32 to vector<8x1xf32>
    %41 = arith.subf %37, %40 : vector<8x1xf32>
    %42 = arith.cmpf one, %41, %41 : vector<8x1xf32>
    %43 = vector.broadcast %cst_14 : f32 to vector<8x1xf32>
    %44 = arith.addf %37, %43 : vector<8x1xf32>
    %45 = math.absf %41 : vector<8x1xf32>
    %cst_15 = arith.constant 0.000000e+00 : f32
    %46 = vector.broadcast %cst_15 : f32 to vector<8x1xf32>
    %47 = arith.subf %46, %45 : vector<8x1xf32>
    %48 = math.exp %47 : vector<8x1xf32>
    %49 = math.log1p %48 : vector<8x1xf32>
    %50 = arith.addf %39, %49 : vector<8x1xf32>
    %51 = arith.select %42, %44, %50 : vector<8x1xi1>, vector<8x1xf32>
    %cst_16 = arith.constant 0.000000e+00 : f32
    %52 = vector.broadcast %cst_16 : f32 to vector<8x1xf32>
    %53 = arith.subf %52, %51 : vector<8x1xf32>
    %cst_17 = arith.constant -1.000000e+02 : f32
    %54 = vector.broadcast %cst_17 : f32 to vector<8x1xf32>
    %55 = arith.maximumf %53, %54 : vector<8x1xf32>
    %56 = arith.mulf %4, %33 : vector<8x1xf32>
    %cst_18 = arith.constant 1.000000e+00 : f32
    %57 = vector.broadcast %cst_18 : f32 to vector<8x1xf32>
    %58 = arith.subf %57, %4 : vector<8x1xf32>
    %59 = arith.mulf %58, %55 : vector<8x1xf32>
    %60 = arith.addf %56, %59 : vector<8x1xf32>
    %cst_19 = arith.constant 0.000000e+00 : f32
    %61 = vector.broadcast %cst_19 : f32 to vector<8x1xf32>
    %62 = arith.subf %61, %60 : vector<8x1xf32>
    %c0_20 = arith.constant 0 : index
    %63 = memref.load %arg7[%c0_20] : memref<6xf32, #tpu.memory_space<smem>>
    %64 = arith.mulf %62, %13 : vector<8x1xf32>
    %65 = vector.shape_cast %64 : vector<8x1xf32> to vector<1x8x1xf32>
    %cst_21 = arith.constant dense<0.000000e+00> : vector<1xf32>
    %66 = vector.multi_reduction <add>, %65, %cst_21 [1, 2] : vector<1x8x1xf32> to vector<1xf32>
    %67 = vector.shape_cast %66 : vector<1xf32> to vector<1x1x1xf32>
    %68 = vector.extract %67[0, 0, 0] : f32 from vector<1x1x1xf32>
    %69 = arith.addf %63, %68 : f32
    %c0_22 = arith.constant 0 : index
    %70 = memref.load %arg7[%c0_22] : memref<6xf32, #tpu.memory_space<smem>>
    memref.store %69, %arg7[%c0_22] : memref<6xf32, #tpu.memory_space<smem>>
    %c1 = arith.constant 1 : index
    %71 = memref.load %arg7[%c1] : memref<6xf32, #tpu.memory_space<smem>>
    %72 = vector.shape_cast %13 : vector<8x1xf32> to vector<1x8x1xf32>
    %cst_23 = arith.constant dense<0.000000e+00> : vector<1xf32>
    %73 = vector.multi_reduction <add>, %72, %cst_23 [1, 2] : vector<1x8x1xf32> to vector<1xf32>
    %74 = vector.shape_cast %73 : vector<1xf32> to vector<1x1x1xf32>
    %75 = vector.extract %74[0, 0, 0] : f32 from vector<1x1x1xf32>
    %76 = arith.addf %71, %75 : f32
    %c1_24 = arith.constant 1 : index
    %77 = memref.load %arg7[%c1_24] : memref<6xf32, #tpu.memory_space<smem>>
    memref.store %76, %arg7[%c1_24] : memref<6xf32, #tpu.memory_space<smem>>
    %cst_25 = arith.constant 0.000000e+00 : f32
    %78 = vector.broadcast %cst_25 : f32 to vector<8x1xf32>
    %79 = arith.cmpf one, %4, %78 : vector<8x1xf32>
    %80 = arith.andi %79, %7 : vector<8x1xi1>
    %81 = arith.extui %80 : vector<8x1xi1> to vector<8x1xi32>
    %82 = arith.sitofp %81 : vector<8x1xi32> to vector<8x1xf32>
    %83 = vector.extract_strided_slice %3 {offsets = [0, 1], sizes = [8, 4], strides = [1, 1]} : vector<8x15xf32> to vector<8x4xf32>
    %c0_26 = arith.constant 0 : index
    %c0_27 = arith.constant 0 : index
    %84 = vector.load %arg3[%c0_26, %c0_27] : memref<8x4xf32, #tpu.memory_space<vmem>>, vector<8x4xf32>
    %85 = arith.subf %83, %84 : vector<8x4xf32>
    %c2 = arith.constant 2 : index
    %86 = memref.load %arg7[%c2] : memref<6xf32, #tpu.memory_space<smem>>
    %87 = arith.mulf %85, %85 : vector<8x4xf32>
    %88 = vector.broadcast %82 : vector<8x1xf32> to vector<8x4xf32>
    %89 = arith.mulf %87, %88 : vector<8x4xf32>
    %90 = vector.shape_cast %89 : vector<8x4xf32> to vector<1x8x4xf32>
    %cst_28 = arith.constant dense<0.000000e+00> : vector<1xf32>
    %91 = vector.multi_reduction <add>, %90, %cst_28 [1, 2] : vector<1x8x4xf32> to vector<1xf32>
    %92 = vector.shape_cast %91 : vector<1xf32> to vector<1x1x1xf32>
    %93 = vector.extract %92[0, 0, 0] : f32 from vector<1x1x1xf32>
    %94 = arith.addf %86, %93 : f32
    %c2_29 = arith.constant 2 : index
    %95 = memref.load %arg7[%c2_29] : memref<6xf32, #tpu.memory_space<smem>>
    memref.store %94, %arg7[%c2_29] : memref<6xf32, #tpu.memory_space<smem>>
    %c3 = arith.constant 3 : index
    %96 = memref.load %arg7[%c3] : memref<6xf32, #tpu.memory_space<smem>>
    %97 = vector.shape_cast %82 : vector<8x1xf32> to vector<1x8x1xf32>
    %cst_30 = arith.constant dense<0.000000e+00> : vector<1xf32>
    %98 = vector.multi_reduction <add>, %97, %cst_30 [1, 2] : vector<1x8x1xf32> to vector<1xf32>
    %99 = vector.shape_cast %98 : vector<1xf32> to vector<1x1x1xf32>
    %100 = vector.extract %99[0, 0, 0] : f32 from vector<1x1x1xf32>
    %cst_31 = arith.constant 4.000000e+00 : f32
    %101 = arith.mulf %100, %cst_31 : f32
    %102 = arith.addf %96, %101 : f32
    %c3_32 = arith.constant 3 : index
    %103 = memref.load %arg7[%c3_32] : memref<6xf32, #tpu.memory_space<smem>>
    memref.store %102, %arg7[%c3_32] : memref<6xf32, #tpu.memory_space<smem>>
    %cst_33 = arith.constant -2.000000e+00 : f32
    %104 = vector.broadcast %cst_33 : f32 to vector<8x1xf32>
    %105 = arith.cmpf oeq, %4, %104 : vector<8x1xf32>
    %106 = arith.andi %105, %7 : vector<8x1xi1>
    %107 = arith.extui %106 : vector<8x1xi1> to vector<8x1xi32>
    %108 = arith.sitofp %107 : vector<8x1xi32> to vector<8x1xf32>
    %109 = vector.extract_strided_slice %3 {offsets = [0, 5], sizes = [8, 10], strides = [1, 1]} : vector<8x15xf32> to vector<8x10xf32>
    %c0_34 = arith.constant 0 : index
    %c0_35 = arith.constant 0 : index
    %110 = vector.load %arg4[%c0_34, %c0_35] : memref<8x10xf32, #tpu.memory_space<vmem>>, vector<8x10xf32>
    %111 = arith.subf %109, %110 : vector<8x10xf32>
    %c4 = arith.constant 4 : index
    %112 = memref.load %arg7[%c4] : memref<6xf32, #tpu.memory_space<smem>>
    %113 = arith.mulf %111, %111 : vector<8x10xf32>
    %114 = vector.broadcast %108 : vector<8x1xf32> to vector<8x10xf32>
    %115 = arith.mulf %113, %114 : vector<8x10xf32>
    %116 = vector.shape_cast %115 : vector<8x10xf32> to vector<1x8x10xf32>
    %cst_36 = arith.constant dense<0.000000e+00> : vector<1xf32>
    %117 = vector.multi_reduction <add>, %116, %cst_36 [1, 2] : vector<1x8x10xf32> to vector<1xf32>
    %118 = vector.shape_cast %117 : vector<1xf32> to vector<1x1x1xf32>
    %119 = vector.extract %118[0, 0, 0] : f32 from vector<1x1x1xf32>
    %120 = arith.addf %112, %119 : f32
    %c4_37 = arith.constant 4 : index
    %121 = memref.load %arg7[%c4_37] : memref<6xf32, #tpu.memory_space<smem>>
    memref.store %120, %arg7[%c4_37] : memref<6xf32, #tpu.memory_space<smem>>
    %c5 = arith.constant 5 : index
    %122 = memref.load %arg7[%c5] : memref<6xf32, #tpu.memory_space<smem>>
    %123 = vector.shape_cast %108 : vector<8x1xf32> to vector<1x8x1xf32>
    %cst_38 = arith.constant dense<0.000000e+00> : vector<1xf32>
    %124 = vector.multi_reduction <add>, %123, %cst_38 [1, 2] : vector<1x8x1xf32> to vector<1xf32>
    %125 = vector.shape_cast %124 : vector<1xf32> to vector<1x1x1xf32>
    %126 = vector.extract %125[0, 0, 0] : f32 from vector<1x1x1xf32>
    %cst_39 = arith.constant 1.000000e+01 : f32
    %127 = arith.mulf %126, %cst_39 : f32
    %128 = arith.addf %122, %127 : f32
    %c5_40 = arith.constant 5 : index
    %129 = memref.load %arg7[%c5_40] : memref<6xf32, #tpu.memory_space<smem>>
    memref.store %128, %arg7[%c5_40] : memref<6xf32, #tpu.memory_space<smem>>
    %c0_i32_41 = arith.constant 0 : i32
    %130 = arith.cmpi eq, %arg0, %c0_i32_41 : i32
    %131 = arith.extui %130 : i1 to i32
    %c0_i32_42 = arith.constant 0 : i32
    %132 = arith.cmpi ne, %131, %c0_i32_42 : i32
    scf.if %132 {
      %c0_43 = arith.constant 0 : index
      %133 = memref.load %arg7[%c0_43] : memref<6xf32, #tpu.memory_space<smem>>
      %c1_44 = arith.constant 1 : index
      %134 = memref.load %arg7[%c1_44] : memref<6xf32, #tpu.memory_space<smem>>
      %cst_45 = arith.constant 0.000000e+00 : f32
      %135 = arith.cmpf ogt, %134, %cst_45 : f32
      %cst_46 = arith.constant 1.000000e+00 : f32
      %136 = arith.maximumf %134, %cst_46 : f32
      %137 = arith.divf %133, %136 : f32
      %cst_47 = arith.constant 0.000000e+00 : f32
      %138 = arith.select %135, %137, %cst_47 : f32
      %c2_48 = arith.constant 2 : index
      %139 = memref.load %arg7[%c2_48] : memref<6xf32, #tpu.memory_space<smem>>
      %c3_49 = arith.constant 3 : index
      %140 = memref.load %arg7[%c3_49] : memref<6xf32, #tpu.memory_space<smem>>
      %cst_50 = arith.constant 0.000000e+00 : f32
      %141 = arith.cmpf ogt, %140, %cst_50 : f32
      %cst_51 = arith.constant 1.000000e+00 : f32
      %142 = arith.maximumf %140, %cst_51 : f32
      %143 = arith.divf %139, %142 : f32
      %cst_52 = arith.constant 0.000000e+00 : f32
      %144 = arith.select %141, %143, %cst_52 : f32
      %c4_53 = arith.constant 4 : index
      %145 = memref.load %arg7[%c4_53] : memref<6xf32, #tpu.memory_space<smem>>
      %c5_54 = arith.constant 5 : index
      %146 = memref.load %arg7[%c5_54] : memref<6xf32, #tpu.memory_space<smem>>
      %cst_55 = arith.constant 0.000000e+00 : f32
      %147 = arith.cmpf ogt, %146, %cst_55 : f32
      %cst_56 = arith.constant 1.000000e+00 : f32
      %148 = arith.maximumf %146, %cst_56 : f32
      %149 = arith.divf %145, %148 : f32
      %cst_57 = arith.constant 0.000000e+00 : f32
      %150 = arith.select %147, %149, %cst_57 : f32
      %cst_58 = arith.constant 1.000000e+00 : f32
      %151 = arith.mulf %138, %cst_58 : f32
      %cst_59 = arith.constant 1.000000e+00 : f32
      %152 = arith.mulf %144, %cst_59 : f32
      %153 = arith.addf %151, %152 : f32
      %cst_60 = arith.constant 1.000000e+00 : f32
      %154 = arith.mulf %150, %cst_60 : f32
      %155 = arith.addf %153, %154 : f32
      %c0_61 = arith.constant 0 : index
      %156 = memref.load %arg6[%c0_61] : memref<4xf32, #tpu.memory_space<smem>>
      memref.store %155, %arg6[%c0_61] : memref<4xf32, #tpu.memory_space<smem>>
      %c1_62 = arith.constant 1 : index
      %157 = memref.load %arg6[%c1_62] : memref<4xf32, #tpu.memory_space<smem>>
      memref.store %138, %arg6[%c1_62] : memref<4xf32, #tpu.memory_space<smem>>
      %c2_63 = arith.constant 2 : index
      %158 = memref.load %arg6[%c2_63] : memref<4xf32, #tpu.memory_space<smem>>
      memref.store %144, %arg6[%c2_63] : memref<4xf32, #tpu.memory_space<smem>>
      %c3_64 = arith.constant 3 : index
      %159 = memref.load %arg6[%c3_64] : memref<4xf32, #tpu.memory_space<smem>>
      memref.store %150, %arg6[%c3_64] : memref<4xf32, #tpu.memory_space<smem>>
    } else {
    }
    return
  }
  func.func @transform_0(%arg0: i32) -> (i32, i32) {
    %c0_i32 = arith.constant 0 : i32
    %c0_i32_0 = arith.constant 0 : i32
    return %arg0, %c0_i32 : i32, i32
  }
  func.func @transform_1(%arg0: i32) -> (i32, i32) {
    %c0_i32 = arith.constant 0 : i32
    %c0_i32_0 = arith.constant 0 : i32
    return %arg0, %c0_i32 : i32, i32
  }
  func.func @transform_2(%arg0: i32) -> (i32, i32) {
    %c0_i32 = arith.constant 0 : i32
    %c0_i32_0 = arith.constant 0 : i32
    return %arg0, %c0_i32 : i32, i32
  }
  func.func @transform_3(%arg0: i32) -> (i32, i32) {
    %c0_i32 = arith.constant 0 : i32
    %c0_i32_0 = arith.constant 0 : i32
    return %arg0, %c0_i32 : i32, i32
  }
  func.func @transform_4(%arg0: i32) -> (i32, i32) {
    %c0_i32 = arith.constant 0 : i32
    %c0_i32_0 = arith.constant 0 : i32
    return %arg0, %c0_i32 : i32, i32
  }
  func.func @transform_5(%arg0: i32) -> i32 {
    %c0_i32 = arith.constant 0 : i32
    %c0_i32_0 = arith.constant 0 : i32
    return %c0_i32 : i32
  }
}

</mosaic_0001>

<bundles_post_ra>
// kernel: tpu_custom_call.1
= control target key start
LH: loop header
LB: loop body
LE: loop exit
PB: predicated region body
PF: predicated region fallthrough
CT: control target
= control target key end

     0   :  { %v346_v3 = vmov 0   ;;  %s347_s24 = smov 5   ;;  %v348_v6 = vmov 0.0   ;;  %s435_s0 = inlined_call_operand.vmem [shape: f32[8,15], index: 0, kind: input, shape index: {}]   ;;  %s436_s1 = inlined_call_operand.vmem [shape: f32[8,1], index: 1, kind: input, shape index: {}]   ;;  %s437_s2 = inlined_call_operand.vmem [shape: f32[8,4], index: 2, kind: input, shape index: {}]   ;;  %s438_s3 = inlined_call_operand.vmem [shape: f32[8,10], index: 3, kind: input, shape index: {}]   ;;  %s439_s4 = inlined_call_operand.vmem [shape: f32[8,1], index: 4, kind: input, shape index: {}]   ;;  %s440_s5 = inlined_call_operand.hbm [shape: f32[4], index: 5, kind: output, shape index: {}]  }
   0x1   :  { %v387_v0 = vld [vmem:[%s436_s1] sm:$0xff]  ;;  %316 = vset.pattern.permute.xlu0 %v346_v3 }
   0x2   :  { %v39_v1 = vld [vmem:[%s439_s4] sm:$0xff]  ;;  %vm122_vm1 = vcmp.ne.f32.partialorder %v387_v0, 0.0  ;;  %vm173_vm2 = vcmp.eq.f32.partialorder %v387_v0, -2.0 }
   0x3   :  { %v177_v2 = vld [vmem:[%s438_s3] sm:$0xff]  ;;  %vm40_vm0 = vcmp.gt.f32.partialorder %v39_v1, 0.0 }
   0x4   :  { %179 = vrot.lane.b32.xlu1 %v177_v2, %s347_s24  ;;  %v400_v4 = vld [vmem:[%s435_s0] sm:$0xff]  ;;  %vm123_vm3 = vmand %vm122_vm1, %vm40_vm0 }
   0x5   :  { %v45_v5 = vsub.f32 0.0, %v400_v4  ;;  %v404_v7 = vsel %vm123_vm3, 1.0, %v348_v6  ;;  %vm174_vm4 = vmand %vm173_vm2, %vm40_vm0 }
   0x6   :  { %v407_v8 = vsel %vm174_vm4, 1.0, %v348_v6 }
   0x7   :  { %v49_v9 = vand.u32 2147483647, %v45_v5  ;;  %v66_v10 = vsub.f32 0.0, %v45_v5 }
   0x8   :  { %10 = vsyncpa [#allocation4], 0  ;;  %v317_v11 = vpack.i.bf16 %v407_v8, %v404_v7  ;;  %v126_v14 = vld [vmem:[%s437_s2] sm:$0xff]  ;;  %s349_s4 = smov 1   ;;  %vm41_vm5 = vcmp.ge.f32.partialorder %v387_v0, 0.0  ;;  %v46_v31 = vmax.f32 %v45_v5, 0.0  ;;  %vm47_vm9 = vcmp.ne.f32.partialorder %v45_v5, %v45_v5 }
   0x9   :  { %v70_v12 = vand.u32 2147483647, %v66_v10  ;;  %v50_v13 = vsub.f32 0.0, %v49_v9  ;;  %vm42_vm6 = vmand %vm41_vm5, %vm40_vm0  ;;  %v67_v35 = vmax.f32 %v66_v10, 0.0  ;;  %vm68_vm10 = vcmp.ne.f32.partialorder %v66_v10, %v66_v10  ;;  %s350_s2 = smov 123   ;;  %s351_s26 = smov 127  }
   0xa   :  { %318 = vperm.xlu0 %316, %v317_v11   ;;  %v277_v18 = vsel %vm42_vm6, 1.0, %v348_v6  ;;  %v88_v45 = vsub.f32 1.0, %v387_v0  ;;  %vm94_vm11 = vcmask 7168   ;;  %vm144_vm12 = vcmask 31744   ;;  %s352_s29 = smov 1.0   ;;  %s353_s22 = smov [#allocation3]  }
   0xb   :  { %v71_v15 = vsub.f32 0.0, %v70_v12  ;;  %v51_v16 = vmul.f32 1.442695, %v50_v13  ;;  %v159_v2 = vsel %vm94_vm11, %v404_v7, 0.0  ;;  %v210_v3 = vsel %vm94_vm11, %v407_v8, 0.0 }
   0xc   :  { %vm195_vm13 = vcmask 80896  }
   0xd   :  { %v72_v17 = vmul.f32 1.442695, %v71_v15  ;;  %322 = vpow2.f32 %v51_v16 }
   0xe   :  { %128 = vrot.lane.b32.xlu0 %v126_v14, %s349_s4 }
   0xf   :  { %324 = vpow2.f32 %v72_v17 }
  0x1a   :  { %v323_v19 = vpop.eup %322 }
  0x1b   :  { %v53_v21 = vadd.f32 1.0, %v323_v19  ;;  %v56_v23 = vmul.f32 -0.5, %v323_v19  ;;  %v59_v26 = vand.u32 2147483647, %v323_v19 }
  0x1c   :  { %v325_v20 = vpop.eup %324 }
  0x1d   :  { %v74_v22 = vadd.f32 1.0, %v325_v20  ;;  %326 = vlog2.f32 %v53_v21  ;;  %v77_v24 = vmul.f32 -0.5, %v325_v20  ;;  %v57_v25 = vadd.f32 1.0, %v56_v23 }
  0x1e   :  { %v80_v28 = vand.u32 2147483647, %v325_v20  ;;  %vm60_vm7 = vcmp.lt.f32.partialorder %v59_v26, 0.0004427343 }
  0x1f   :  { %328 = vlog2.f32 %v74_v22  ;;  %v78_v27 = vadd.f32 1.0, %v77_v24  ;;  %v58_v29 = vmul.f32 %v323_v19, %v57_v25 }
  0x20   :  { %vm81_vm8 = vcmp.lt.f32.partialorder %v80_v28, 0.0004427343 }
  0x21   :  { %v79_v32 = vmul.f32 %v325_v20, %v78_v27 }
  0x2a   :  { %v327_v30 = vpop.eup %326 }
  0x2b   :  { %v55_v34 = vmul.f32 0.6931472, %v327_v30 }
  0x2c   :  { %v329_v33 = vpop.eup %328 }
  0x2d   :  { %v76_v36 = vmul.f32 0.6931472, %v329_v33  ;;  %v61_v37 = vsel %vm60_vm7, %v58_v29, %v55_v34 }
  0x2e   :  { %v62_v38 = vadd.f32 %v61_v37, %v46_v31 }
  0x2f   :  { %v82_v39 = vsel %vm81_vm8, %v79_v32, %v76_v36 }
  0x30   :  { %v83_v40 = vadd.f32 %v82_v39, %v67_v35  ;;  %v63_v41 = vsel %vm47_vm9, %v45_v5, %v62_v38 }
  0x31   :  { %v64_v42 = vsub.f32 0.0, %v63_v41 }
  0x32   :  { %v84_v43 = vsel %vm68_vm10, %v66_v10, %v83_v40 }
  0x33   :  { %v85_v44 = vsub.f32 0.0, %v84_v43  ;;  %v65_v46 = vmax.f32 %v64_v42, -100.0 }
  0x35   :  { %v86_v47 = vmax.f32 %v85_v44, -100.0  ;;  %v87_v48 = vmul.f32 %v65_v46, %v387_v0  ;;  %v109_v0 = vsel %vm94_vm11, %v277_v18, 0.0 }
  0x37   :  { %v89_v49 = vmul.f32 %v88_v45, %v86_v47 }
  0x39   :  { %v90_v50 = vadd.f32 %v89_v49, %v87_v48 }
  0x3b   :  { %v91_v51 = vsub.f32 0.0, %v90_v50 }
  0x3d   :  { %v93_v52 = vmul.f32 %v277_v18, %v91_v51 }
  0x3f   :  { %v95_v1 = vsel %vm94_vm11, %v93_v52, 0.0 }
  0x76   :  { %v180_v53 = vpop.permute.xlu1 %179 }
  0x77   :  { %v182_v54 = vsub.f32 %v400_v4, %v180_v53 }
  0x79   :  { %v184_v55 = vmul.f32 %v182_v54, %v182_v54 }
  0x85   :  { %v319_v56 = vpop.permute.xlu0 %318 }
  0x86   :  { %v321_v57 = vunpack.i.h.bf16 %v319_v56  ;;  %v320_v61 = vunpack.i.l.bf16 %v319_v56 }
  0x88   :  { %v190_v58 = vmul.f32 %v321_v57, %v184_v55 }
  0x89   :  { %v129_v59 = vpop.permute.xlu0 %128 }
  0x8a   :  { %v131_v60 = vsub.f32 %v400_v4, %v129_v59  ;;  %192 = vrot.lane.b32.xlu0 %v190_v58, %s350_s2 }
  0x8c   :  { %v133_v62 = vmul.f32 %v131_v60, %v131_v60 }
  0x8e   :  { %v139_v63 = vmul.f32 %v320_v61, %v133_v62 }
  0x90   :  { %141 = vrot.lane.b32.xlu1 %v139_v63, %s351_s26 }
  0xa9   :  { %110 = vadd.xlane.f32.xlu0 %v109_v0 }
  0xb4   :  { %96 = vadd.xlane.f32.xlu1 %v95_v1 }
  0xb8   :  { %160 = vadd.xlane.f32.xlu1 %v159_v2 }
  0xbc   :  { %211 = vadd.xlane.f32.xlu1 %v210_v3 }
  0xfc   :  { %v193_v6 = vpop.permute.xlu0 %192 }
  0xfd   :  { %v196_v9 = vsel %vm195_vm13, %v193_v6, 0.0 }
 0x102   :  { %v142_v4 = vpop.permute.xlu1 %141 }
 0x103   :  { %v145_v5 = vsel %vm144_vm12, %v142_v4, 0.0 }
 0x104   :  { %146 = vadd.xlane.f32.xlu0 %v145_v5 }
 0x108   :  { %197 = vadd.xlane.f32.xlu0 %v196_v9 }
 0x132   :  { %v111_v10 = vpop.xlane.xlu0 %110 }
 0x133   :  { %v112_v11 = vrot.slane %v111_v10, 4 }
 0x135   :  { %v113_v12 = vadd.f32 %v112_v11, %v111_v10 }
 0x137   :  { %v114_v13 = vrot.slane %v113_v12, 2 }
 0x139   :  { %v115_v16 = vadd.f32 %v114_v13, %v113_v12 }
 0x13b   :  { %v116_v18 = vrot.slane %v115_v16, 1 }
 0x13d   :  { %v97_v14 = vpop.xlane.xlu1 %96  ;;  %v117_v20 = vadd.f32 %v116_v18, %v115_v16 }
 0x13e   :  { %v98_v15 = vrot.slane %v97_v14, 4 }
 0x140   :  { %v99_v7 = vadd.f32 %v98_v15, %v97_v14 }
 0x141   :  { %v161_v22 = vpop.xlane.xlu1 %160 }
 0x142   :  { %v100_v17 = vrot.slane %v99_v7, 2  ;;  %v162_v23 = vrot.slane %v161_v22, 4 }
 0x144   :  { %v101_v8 = vadd.f32 %v100_v17, %v99_v7  ;;  %v163_v25 = vadd.f32 %v162_v23, %v161_v22 }
 0x145   :  { %v212_v24 = vpop.xlane.xlu1 %211 }
 0x146   :  { %v102_v19 = vrot.slane %v101_v8, 1  ;;  %v213_v26 = vrot.slane %v212_v24, 4  ;;  %v164_v27 = vrot.slane %v163_v25, 2 }
 0x148   :  { %v103_v21 = vadd.f32 %v102_v19, %v101_v8  ;;  %v214_v28 = vadd.f32 %v213_v26, %v212_v24  ;;  %v165_v35 = vadd.f32 %v164_v27, %v163_v25 }
 0x14a   :  { %290 = vpush %v103_v21  ;;  %v215_v33 = vrot.slane %v214_v28, 2  ;;  %v166_v41 = vrot.slane %v165_v35, 1 }
 0x14b   :  { %292 = vpush %v117_v20 }
 0x14c   :  { %v216_v40 = vadd.f32 %v215_v33, %v214_v28  ;;  %v167_v46 = vadd.f32 %v166_v41, %v165_v35 }
 0x14e   :  { %v217_v47 = vrot.slane %v216_v40, 1 }
 0x150   :  { %v218_v51 = vadd.f32 %v217_v47, %v216_v40 }
 0x17b   :  { %s422_s27 = spop %290 }
 0x17c   :  { %s424_s28 = spop %292 }
 0x17d   :  { %s230_s30 = smax.f32 %s352_s29, %s424_s28  ;;  %p229_p0 = scmp.gt.f32.partialorder %s424_s28, 0.0 }
 0x17e   :  { %v231_v30 = vstv %s230_s30 }
 0x17f   :  { %330 = vrcp.f32 %v231_v30 }
 0x18c   :  { %v331_v50 = vpop.eup %330 }
 0x18d   :  { %v147_v29 = vpop.xlane.xlu0 %146 }
 0x18e   :  { %v148_v31 = vrot.slane %v147_v29, 4 }
 0x190   :  { %v149_v32 = vadd.f32 %v148_v31, %v147_v29 }
 0x191   :  { %v198_v34 = vpop.xlane.xlu0 %197 }
 0x192   :  { %v150_v36 = vrot.slane %v149_v32, 2  ;;  %v199_v37 = vrot.slane %v198_v34, 4 }
 0x194   :  { %v200_v38 = vadd.f32 %v199_v37, %v198_v34  ;;  %v151_v39 = vadd.f32 %v150_v36, %v149_v32 }
 0x196   :  { %v201_v42 = vrot.slane %v200_v38, 2  ;;  %v152_v43 = vrot.slane %v151_v39, 1 }
 0x198   :  { %v202_v44 = vadd.f32 %v201_v42, %v200_v38  ;;  %v153_v45 = vadd.f32 %v152_v43, %v151_v39 }
 0x19a   :  { %294 = vpush %v153_v45  ;;  %v203_v48 = vrot.slane %v202_v44, 1 }
 0x19b   :  { %296 = vpush %v167_v46 }
 0x19c   :  { %v204_v49 = vadd.f32 %v203_v48, %v202_v44 }
 0x19e   :  { %298 = vpush %v204_v49 }
 0x19f   :  { %300 = vpush %v218_v51 }
 0x1a0   :  { %302 = vpush %v331_v50 }
 0x1cb   :  { %s295_s6 = spop %294 }
 0x1cc   :  { %s297_s7 = spop %296 }
 0x1cd   :  { %s169_s8 = smul.f32 4.0, %s297_s7 }
 0x1cf   :  { %s239_s9 = smax.f32 %s352_s29, %s169_s8  ;;  %s299_s10 = spop %298 }
 0x1d0   :  { %v240_v52 = vstv %s239_s9  ;;  %s301_s11 = spop %300  ;;  %p238_p1 = scmp.gt.f32.partialorder %s169_s8, 0.0 }
 0x1d1   :  { %332 = vrcp.f32 %v240_v52  ;;  %s220_s12 = smul.f32 10.0, %s301_s11  ;;  %s303_s13 = spop %302 }
 0x1d2   :  { %s234_s14 = smul.f32 %s303_s13, %s422_s27 }
 0x1d3   :  { %s248_s15 = smax.f32 %s352_s29, %s220_s12  ;;  %p247_p2 = scmp.gt.f32.partialorder %s220_s12, 0.0 }
 0x1d4   :  { %v249_v53 = vstv %s248_s15  ;;  %s442_s14 = smov (!%p229_p0, %s234_s14), 0.0 }
 0x1d5   :  { %334 = vrcp.f32 %v249_v53  ;;  %259 = sst [smem:[#allocation3 + $0x1]] %s442_s14 }
 0x1de   :  { %v333_v54 = vpop.eup %332 }
 0x1df   :  { %304 = vpush %v333_v54 }
 0x1e2   :  { %v335_v55 = vpop.eup %334 }
 0x1e3   :  { %306 = vpush %v335_v55 }
 0x210   :  { %s305_s16 = spop %304 }
 0x211   :  { %s243_s17 = smul.f32 %s305_s16, %s295_s6 }
 0x213   :  { %s444_s17 = smov (!%p238_p1, %s243_s17), 0.0 }
 0x214   :  { %s254_s18 = sadd.f32 %s444_s17, %s442_s14  ;;  %s307_s19 = spop %306 }
 0x215   :  { %261 = sst [smem:[#allocation3 + $0x2]] %s444_s17  ;;  %s252_s20 = smul.f32 %s307_s19, %s299_s10 }
 0x217   :  { %s446_s20 = smov (!%p247_p2, %s252_s20), 0.0 }
 0x218   :  { %s255_s21 = sadd.f32 %s254_s18, %s446_s20 }
 0x219   :  { %263 = sst [smem:[#allocation3 + $0x3]] %s446_s20 }
 0x21a   :  { %257 = sst [smem:[#allocation3]] %s255_s21 }
 0x21b   :  { %271 = dma.smem_to_hbm %s353_s22, 16, %s440_s5, [#allocation4]  }
 0x21c   :  { %344 = dma.done.wait [#allocation4], 16  }
 0x21d   :  { %345 = vsyncadd [#allocation4], 4294967280 }
 0x21e   :  { %275 = sfence }
 0x21f   :  { %276 = vsyncpa [#allocation4], 1 }

</bundles_post_ra>
